<compile_context>
chip_gen: v6e
topology: v6e:2x2x1
jax: 0.10.0
libtpu: 0.0.40
codegen_flags: <defaults>
</compile_context>

<pallas_src>
import functools

import jax
import jax.numpy as jnp
from jax.experimental import pallas as pl
from jax.experimental.pallas import tpu as pltpu


def _gap_kernel(x_ref, o_ref, acc_ref, *, true_len, tile_len, reduce_axis):
    """Running-sum reduction over the step axis of one (Bt, ...) block."""
    k = pl.program_id(1)

    @pl.when(k == 0)
    def _init():
        acc_ref[...] = jnp.zeros_like(acc_ref)

    x = x_ref[...]
    if true_len % tile_len != 0:
        # Mask the out-of-range tail of the last step tile.
        start = k * tile_len
        ids = start + jax.lax.broadcasted_iota(jnp.int32, x.shape, reduce_axis)
        x = jnp.where(ids < true_len, x, jnp.zeros_like(x))

    # Accumulate in f32 without materializing an f32 copy of the whole tile.
    acc_ref[...] += jnp.sum(x, axis=reduce_axis, dtype=jnp.float32)

    @pl.when(k == pl.num_programs(1) - 1)
    def _finish():
        o_ref[...] = (acc_ref[...] * (1.0 / true_len)).astype(o_ref.dtype)


def _pick_tiles(B, L, C, itemsize, lane_reduce, max_block_bytes):
    """Choose (Bt, tL) so one input block stays near max_block_bytes."""
    g = 128 if lane_reduce else 8          # tiling granularity along the step axis
    row_bytes = L * C * itemsize           # one batch row at full L
    if row_bytes <= max_block_bytes:
        tL = L
        bt_cap = max(1, max_block_bytes // row_bytes)
        if B <= bt_cap:
            Bt = B
        else:
            Bt = max(8, (bt_cap // 8) * 8)
            if Bt > B:
                Bt = B
        # Keep >=2 batch blocks when B is large enough so both v7x TensorCores
        # get work (no-op on single-core v5e/v6e).
        if B >= 16:
            half = max(8, (((B + 1) // 2) // 8) * 8)
            Bt = min(Bt, half)
    else:
        Bt = B if B < 8 else 8
        per_row = max(1, max_block_bytes // Bt)
        tl = per_row // (C * itemsize)
        tl = max(g, (tl // g) * g)
        tL = min(L, tl)
    return int(Bt), int(tL)


def global_avg_pooling_1d(x, data_format="channels_last", *,
                          max_block_bytes=4 * 1024 * 1024,
                          min_pallas_elems=4096):
    """Mean over the step axis with keepdim=True (GlobalAvgPooling1D)."""
    if data_format not in ("channels_last", "channels_first"):
        raise ValueError(f"unknown data_format: {data_format}")
    if x.ndim != 3:
        raise ValueError(f"expected a rank-3 input, got shape {x.shape}")

    step_axis = 1 if data_format == "channels_last" else 2

    # Tiny tensors: a multi-step pallas_call is pure overhead, let XLA fuse it.
    if x.size <= min_pallas_elems:
        return jnp.mean(x, axis=step_axis, keepdims=True)

    B = x.shape[0]
    if data_format == "channels_last":
        _, L, C = x.shape          # reduce the sublane axis of each block
        lane_reduce = False
    else:
        _, C, L = x.shape          # reduce the lane axis of each block
        lane_reduce = True

    itemsize = jnp.dtype(x.dtype).itemsize
    Bt, tL = _pick_tiles(B, L, C, itemsize, lane_reduce, max_block_bytes)

    grid = (pl.cdiv(B, Bt), pl.cdiv(L, tL))   # step axis last ("arbitrary")

    if data_format == "channels_last":
        in_spec = pl.BlockSpec((Bt, tL, C), lambda b, k: (b, k, 0))
        reduce_axis = 1
    else:
        in_spec = pl.BlockSpec((Bt, C, tL), lambda b, k: (b, 0, k))
        reduce_axis = 2
    out_spec = pl.BlockSpec((Bt, C), lambda b, k: (b, 0))

    kernel = functools.partial(
        _gap_kernel, true_len=L, tile_len=tL, reduce_axis=reduce_axis)

    out2d = pl.pallas_call(
        kernel,
        out_shape=jax.ShapeDtypeStruct((B, C), x.dtype),
        grid=grid,
        in_specs=[in_spec],
        out_specs=out_spec,
        scratch_shapes=[pltpu.VMEM((Bt, C), jnp.float32)],
        compiler_params=pltpu.CompilerParams(
            dimension_semantics=("parallel", "arbitrary"),
            vmem_limit_bytes=32 * 1024 * 1024,
        ),
    )(x)

    if data_format == "channels_last":
        return out2d[:, None, :]   # (B, 1, C)
    else:
        return out2d[:, :, None]   # (B, C, 1)


if __name__ == "__main__":
    key = jax.random.PRNGKey(0)
    k1, k2, k3 = jax.random.split(key, 3)

    # channels_first, ViraMINER-like conv output (B, M, L-K+1): mean over axis 2.
    B, M, L = 8, 10, 293
    x_cf = jax.random.normal(k1, (B, M, L), dtype=jnp.float32)
    y_cf = jax.block_until_ready(global_avg_pooling_1d(x_cf, "channels_first"))
    ref_cf = jnp.mean(x_cf, axis=2, keepdims=True)
    assert y_cf.shape == (B, M, 1), y_cf.shape
    assert jnp.allclose(y_cf, ref_cf, atol=1e-5, rtol=1e-5), "channels_first mismatch"

    # channels_last: mean over axis 1.
    B2, L2, C2 = 8, 512, 48
    x_cl = jax.random.normal(k2, (B2, L2, C2), dtype=jnp.float32)
    y_cl = jax.block_until_ready(global_avg_pooling_1d(x_cl, "channels_last"))
    ref_cl = jnp.mean(x_cl, axis=1, keepdims=True)
    assert y_cl.shape == (B2, 1, C2), y_cl.shape
    assert jnp.allclose(y_cl, ref_cl, atol=1e-5, rtol=1e-5), "channels_last mismatch"

    # Force step-axis tiling + tail masking (accumulator path) with tiny budgets.
    y_cl_t = jax.block_until_ready(
        global_avg_pooling_1d(x_cl, "channels_last", max_block_bytes=40 * 1024))
    assert jnp.allclose(y_cl_t, ref_cl, atol=1e-5, rtol=1e-5), "tiled channels_last mismatch"

    y_cf_t = jax.block_until_ready(
        global_avg_pooling_1d(x_cf, "channels_first", max_block_bytes=8 * 1024))
    assert jnp.allclose(y_cf_t, ref_cf, atol=1e-5, rtol=1e-5), "tiled channels_first mismatch"

    # Tiny-input fallback path (XLA-fused mean).
    x_tiny = jax.random.normal(k3, (2, 8, 32), dtype=jnp.float32)
    y_tiny = jax.block_until_ready(global_avg_pooling_1d(x_tiny, "channels_last"))
    assert jnp.allclose(y_tiny, jnp.mean(x_tiny, axis=1, keepdims=True), atol=1e-6)

    print("KERNEL_OK")
</pallas_src>

<mosaic_0001>
module attributes {stable_mosaic.version = 11 : i64} {
  func.func @_gap_kernel(%arg0: i32, %arg1: i32, %arg2: memref<8x10x293xf32, #tpu.memory_space<vmem>>, %arg3: memref<8x10xf32, #tpu.memory_space<vmem>>, %arg4: memref<8x10xf32, #tpu.memory_space<vmem>>) attributes {dimension_semantics = [#tpu.dimension_semantics<parallel>, #tpu.dimension_semantics<arbitrary>], iteration_bounds = array<i64: 1, 1>, scalar_prefetch = 0 : i64, scratch_operands = 1 : i64, tpu.core_type = #tpu.core_type<tc>, window_params = [{transform_indices = @transform_0, window_bounds = array<i64: 8, 10, 293>}, {transform_indices = @transform_1, window_bounds = array<i64: 8, 10>}]} {
    %c0_i32 = arith.constant 0 : i32
    %0 = arith.cmpi eq, %arg1, %c0_i32 : i32
    %1 = arith.extui %0 : i1 to i32
    %c0_i32_0 = arith.constant 0 : i32
    %2 = arith.cmpi ne, %1, %c0_i32_0 : i32
    scf.if %2 {
      %cst_9 = arith.constant 0.000000e+00 : f32
      %11 = vector.broadcast %cst_9 : f32 to vector<8x10xf32>
      %c0_10 = arith.constant 0 : index
      %c0_11 = arith.constant 0 : index
      %12 = vector.load %arg4[%c0_10, %c0_11] : memref<8x10xf32, #tpu.memory_space<vmem>>, vector<8x10xf32>
      tpu.vector_store %arg4[%c0_10, %c0_11], %11 {strides = array<i32>} : memref<8x10xf32, #tpu.memory_space<vmem>>, vector<8x10xf32>,
    } else {
    }
    %c0 = arith.constant 0 : index
    %c0_1 = arith.constant 0 : index
    %c0_2 = arith.constant 0 : index
    %3 = vector.load %arg2[%c0, %c0_1, %c0_2] : memref<8x10x293xf32, #tpu.memory_space<vmem>>, vector<8x10x293xf32>
    %c0_3 = arith.constant 0 : index
    %c0_4 = arith.constant 0 : index
    %4 = vector.load %arg4[%c0_3, %c0_4] : memref<8x10xf32, #tpu.memory_space<vmem>>, vector<8x10xf32>
    %cst = arith.constant dense<0.000000e+00> : vector<8x10xf32>
    %5 = vector.multi_reduction <add>, %3, %cst [2] : vector<8x10x293xf32> to vector<8x10xf32>
    %6 = arith.addf %4, %5 : vector<8x10xf32>
    %c0_5 = arith.constant 0 : index
    %c0_6 = arith.constant 0 : index
    %7 = vector.load %arg4[%c0_5, %c0_6] : memref<8x10xf32, #tpu.memory_space<vmem>>, vector<8x10xf32>
    tpu.vector_store %arg4[%c0_5, %c0_6], %6 {strides = array<i32>} : memref<8x10xf32, #tpu.memory_space<vmem>>, vector<8x10xf32>,
    %c0_i32_7 = arith.constant 0 : i32
    %8 = arith.cmpi eq, %arg1, %c0_i32_7 : i32
    %9 = arith.extui %8 : i1 to i32
    %c0_i32_8 = arith.constant 0 : i32
    %10 = arith.cmpi ne, %9, %c0_i32_8 : i32
    scf.if %10 {
      %c0_9 = arith.constant 0 : index
      %c0_10 = arith.constant 0 : index
      %11 = vector.load %arg4[%c0_9, %c0_10] : memref<8x10xf32, #tpu.memory_space<vmem>>, vector<8x10xf32>
      %cst_11 = arith.constant 0.00341296918 : f32
      %12 = vector.broadcast %cst_11 : f32 to vector<8x10xf32>
      %13 = arith.mulf %11, %12 : vector<8x10xf32>
      %c0_12 = arith.constant 0 : index
      %c0_13 = arith.constant 0 : index
      %14 = vector.load %arg3[%c0_12, %c0_13] : memref<8x10xf32, #tpu.memory_space<vmem>>, vector<8x10xf32>
      tpu.vector_store %arg3[%c0_12, %c0_13], %13 {strides = array<i32>} : memref<8x10xf32, #tpu.memory_space<vmem>>, vector<8x10xf32>,
    } else {
    }
    return
  }
  func.func @transform_0(%arg0: i32, %arg1: i32) -> (i32, i32, i32) {
    %c0_i32 = arith.constant 0 : i32
    %c0_i32_0 = arith.constant 0 : i32
    return %arg0, %c0_i32, %arg1 : i32, i32, i32
  }
  func.func @transform_1(%arg0: i32, %arg1: i32) -> (i32, i32) {
    %c0_i32 = arith.constant 0 : i32
    %c0_i32_0 = arith.constant 0 : i32
    return %arg0, %c0_i32 : i32, i32
  }
}

</mosaic_0001>

<bundles_post_ra>
// kernel: tpu_custom_call.1
= control target key start
LH: loop header
LB: loop body
LE: loop exit
PB: predicated region body
PF: predicated region fallthrough
CT: control target
= control target key end

     0   :  { %vm65_vm0 = vcmask 302080   ;;  %vm70_vm1 = vcmask 1041408   ;;  %vm74_vm2 = vcmask 295936   ;;  %s519_s0 = inlined_call_operand.vmem [shape: f32[8,10,293], index: 0, kind: input, shape index: {}]   ;;  %s520_s1 = inlined_call_operand.hbm [shape: f32[8,10], index: 1, kind: output, shape index: {}]  }
   0x1   :  { %v21_v0 = vld [vmem:[%s519_s0 + $0x30] sm:$0xff]  ;;  %v22_v1 = vld [vmem:[%s519_s0 + $0x38] sm:$0xff]  ;;  %v23_v2 = vld [vmem:[%s519_s0 + $0x40] sm:$0xff] }
   0x2   :  { %v79_v3 = vadd.f32 %v22_v1, %v21_v0  ;;  %v80_v4 = vsel %vm65_vm0, %v23_v2, 0.0  ;;  %v15_v5 = vld [vmem:[%s519_s0] sm:$0xff]  ;;  %v16_v6 = vld [vmem:[%s519_s0 + $0x8] sm:$0xff]  ;;  %v17_v7 = vld [vmem:[%s519_s0 + $0x10] sm:$0xff] }
   0x3   :  { %v64_v8 = vadd.f32 %v16_v6, %v15_v5  ;;  %v66_v9 = vsel %vm65_vm0, %v17_v7, 0.0  ;;  %v24_v10 = vld [vmem:[%s519_s0 + $0x48] sm:$0x3]  ;;  %v25_v11 = vld [vmem:[%s519_s0 + $0x50] sm:$0x3]  ;;  %v27_v12 = vld [vmem:[%s519_s0 + $0x60] sm:$0xff] }
   0x4   :  { %v81_v13 = vadd.f32 %v80_v4, %v79_v3  ;;  %v26_v14 = vld [vmem:[%s519_s0 + $0x58] sm:$0x3]  ;;  %v84_v15 = vsel %vm70_vm1, %v24_v10, 0.0  ;;  %v85_v16 = vsel %vm70_vm1, %v25_v11, 0.0  ;;  %v19_v21 = vld [vmem:[%s519_s0 + $0x20] sm:$0x3] }
   0x5   :  { %v18_v17 = vld [vmem:[%s519_s0 + $0x18] sm:$0x3]  ;;  %v67_v18 = vadd.f32 %v66_v9, %v64_v8  ;;  %v86_v19 = vadd.f32 %v85_v16, %v84_v15  ;;  %v87_v20 = vsel %vm74_vm2, %v26_v14, 0.0  ;;  %v20_v22 = vld [vmem:[%s519_s0 + $0x28] sm:$0x3]  ;;  %v72_v24 = vsel %vm70_vm1, %v19_v21, 0.0 }
   0x6   :  { %v71_v23 = vsel %vm70_vm1, %v18_v17, 0.0  ;;  %82 = vadd.xlane.f32.xlu1 %v81_v13  ;;  %v75_v25 = vsel %vm74_vm2, %v20_v22, 0.0  ;;  %v30_v26 = vld [vmem:[%s519_s0 + $0x78] sm:$0x3]  ;;  %v31_v27 = vld [vmem:[%s519_s0 + $0x80] sm:$0x3] }
   0x7   :  { %68 = vadd.xlane.f32.xlu0 %v67_v18  ;;  %v88_v28 = vadd.f32 %v87_v20, %v86_v19  ;;  %v73_v29 = vadd.f32 %v72_v24, %v71_v23  ;;  %v32_v30 = vld [vmem:[%s519_s0 + $0x88] sm:$0x3]  ;;  %v96_v31 = vsel %vm70_vm1, %v30_v26, 0.0  ;;  %v97_v32 = vsel %vm70_vm1, %v31_v27, 0.0  ;;  %v29_v34 = vld [vmem:[%s519_s0 + $0x70] sm:$0xff]  ;;  %v34_v46 = vld [vmem:[%s519_s0 + $0x98] sm:$0xff] }
   0x8   :  { %v28_v33 = vld [vmem:[%s519_s0 + $0x68] sm:$0xff]  ;;  %v98_v35 = vadd.f32 %v97_v32, %v96_v31  ;;  %v99_v36 = vsel %vm74_vm2, %v32_v30, 0.0  ;;  %v92_v38 = vsel %vm65_vm0, %v29_v34, 0.0  ;;  %v37_v40 = vld [vmem:[%s519_s0 + $0xb0] sm:$0x3]  ;;  %v35_v50 = vld [vmem:[%s519_s0 + $0xa0] sm:$0xff] }
   0x9   :  { %v91_v37 = vadd.f32 %v28_v33, %v27_v12  ;;  %v36_v39 = vld [vmem:[%s519_s0 + $0xa8] sm:$0x3]  ;;  %v76_v41 = vadd.f32 %v75_v25, %v73_v29  ;;  %v38_v42 = vld [vmem:[%s519_s0 + $0xb8] sm:$0x3]  ;;  %v109_v44 = vsel %vm70_vm1, %v37_v40, 0.0  ;;  %v33_v45 = vld [vmem:[%s519_s0 + $0x90] sm:$0xff] }
   0xa   :  { %v108_v43 = vsel %vm70_vm1, %v36_v39, 0.0  ;;  %89 = vadd.xlane.f32.xlu1 %v88_v28  ;;  %v100_v47 = vadd.f32 %v99_v36, %v98_v35  ;;  %v42_v51 = vld [vmem:[%s519_s0 + $0xd8] sm:$0x3]  ;;  %v43_v52 = vld [vmem:[%s519_s0 + $0xe0] sm:$0x3]  ;;  %v111_v53 = vsel %vm74_vm2, %v38_v42, 0.0  ;;  %v103_v54 = vadd.f32 %v34_v46, %v33_v45 }
   0xb   :  { %v93_v48 = vadd.f32 %v92_v38, %v91_v37  ;;  %v110_v49 = vadd.f32 %v109_v44, %v108_v43  ;;  %77 = vadd.xlane.f32.xlu0 %v76_v41  ;;  %v44_v55 = vld [vmem:[%s519_s0 + $0xe8] sm:$0x3]  ;;  %v120_v56 = vsel %vm70_vm1, %v42_v51, 0.0  ;;  %v121_v57 = vsel %vm70_vm1, %v43_v52, 0.0  ;;  %v39_v59 = vld [vmem:[%s519_s0 + $0xc0] sm:$0xff]  ;;  %v41_v63 = vld [vmem:[%s519_s0 + $0xd0] sm:$0xff] }
   0xc   :  { %v104_v58 = vsel %vm65_vm0, %v35_v50, 0.0  ;;  %v40_v60 = vld [vmem:[%s519_s0 + $0xc8] sm:$0xff]  ;;  %v122_v62 = vadd.f32 %v121_v57, %v120_v56  ;;  %v49_v0 = vld [vmem:[%s519_s0 + $0x110] sm:$0x3]  ;;  %v123_v2 = vsel %vm74_vm2, %v44_v55, 0.0  ;;  %v46_v9 = vld [vmem:[%s519_s0 + $0xf8] sm:$0xff] }
   0xd   :  { %v48_v61 = vld [vmem:[%s519_s0 + $0x108] sm:$0x3]  ;;  %v112_v1 = vadd.f32 %v111_v53, %v110_v49  ;;  %v50_v3 = vld [vmem:[%s519_s0 + $0x118] sm:$0x3]  ;;  %v105_v4 = vadd.f32 %v104_v58, %v103_v54  ;;  %v115_v5 = vadd.f32 %v40_v60, %v39_v59  ;;  %v133_v7 = vsel %vm70_vm1, %v49_v0, 0.0  ;;  %v45_v8 = vld [vmem:[%s519_s0 + $0xf0] sm:$0xff] }
   0xe   :  { %101 = vadd.xlane.f32.xlu1 %v100_v47  ;;  %v132_v6 = vsel %vm70_vm1, %v48_v61, 0.0  ;;  %v47_v10 = vld [vmem:[%s519_s0 + $0x100] sm:$0xff]  ;;  %v116_v11 = vsel %vm65_vm0, %v41_v63, 0.0  ;;  %v54_v12 = vld [vmem:[%s519_s0 + $0x138] sm:$0x3]  ;;  %v124_v14 = vadd.f32 %v123_v2, %v122_v62  ;;  %v135_v16 = vsel %vm74_vm2, %v50_v3, 0.0 }
   0xf   :  { %94 = vadd.xlane.f32.xlu0 %v93_v48  ;;  %v55_v13 = vld [vmem:[%s519_s0 + $0x140] sm:$0x3]  ;;  %v134_v15 = vadd.f32 %v133_v7, %v132_v6  ;;  %v127_v17 = vadd.f32 %v46_v9, %v45_v8  ;;  %v128_v18 = vsel %vm65_vm0, %v47_v10, 0.0  ;;  %v117_v20 = vadd.f32 %v116_v11, %v115_v5  ;;  %v56_v21 = vld [vmem:[%s519_s0 + $0x148] sm:$0x3] }
  0x10   :  { %v51_v19 = vld [vmem:[%s519_s0 + $0x120] sm:$0xff]  ;;  %v144_v22 = vsel %vm70_vm1, %v54_v12, 0.0  ;;  %v145_v23 = vsel %vm70_vm1, %v55_v13, 0.0 }
  0x12   :  { %113 = vadd.xlane.f32.xlu1 %v112_v1 }
  0x13   :  { %106 = vadd.xlane.f32.xlu0 %v105_v4 }
  0x14   :  { %6 = vsyncpa [#allocation4], 0  ;;  %v52_v24 = vld [vmem:[%s519_s0 + $0x128] sm:$0xff]  ;;  %v61_v26 = vld [vmem:[%s519_s0 + $0x170] sm:$0x3]  ;;  %v136_v28 = vadd.f32 %v135_v16, %v134_v15  ;;  %v129_v29 = vadd.f32 %v128_v18, %v127_v17  ;;  %v146_v30 = vadd.f32 %v145_v23, %v144_v22  ;;  %v147_v31 = vsel %vm74_vm2, %v56_v21, 0.0 }
  0x15   :  { %v60_v25 = vld [vmem:[%s519_s0 + $0x168] sm:$0x3]  ;;  %v53_v27 = vld [vmem:[%s519_s0 + $0x130] sm:$0xff]  ;;  %v139_v32 = vadd.f32 %v52_v24, %v51_v19  ;;  %v157_v34 = vsel %vm70_vm1, %v61_v26, 0.0  ;;  %v62_v36 = vld [vmem:[%s519_s0 + $0x178] sm:$0x3]  ;;  %v179_v53 = vlaneseq }
  0x16   :  { %125 = vadd.xlane.f32.xlu1 %v124_v14  ;;  %v156_v33 = vsel %vm70_vm1, %v60_v25, 0.0  ;;  %v140_v35 = vsel %vm65_vm0, %v53_v27, 0.0  ;;  %v57_v37 = vld [vmem:[%s519_s0 + $0x150] sm:$0xff]  ;;  %v58_v38 = vld [vmem:[%s519_s0 + $0x158] sm:$0xff]  ;;  %v59_v39 = vld [vmem:[%s519_s0 + $0x160] sm:$0xff]  ;;  %v148_v40 = vadd.f32 %v147_v31, %v146_v30  ;;  %v159_v43 = vsel %vm74_vm2, %v62_v36, 0.0 }
  0x17   :  { %118 = vadd.xlane.f32.xlu0 %v117_v20  ;;  %v158_v41 = vadd.f32 %v157_v34, %v156_v33  ;;  %v141_v42 = vadd.f32 %v140_v35, %v139_v32  ;;  %v151_v44 = vadd.f32 %v58_v38, %v57_v37  ;;  %v152_v45 = vsel %vm65_vm0, %v59_v39, 0.0  ;;  %s318_s0 = smov [#allocation3]  }
  0x18   :  { %vm13_vm3 = vcmask 80896   ;;  %v317_v48 = vmov 0.0   ;;  %v180_v56 = vand.u32 127, %v179_v53  ;;  %v182_v60 = vshrl.u32 %v179_v53, 7  ;;  %s285_s15 = sshll.u32 %s318_s0, 4  ;;  %s286_s15 = int_to_ptr.vmem [resolvable:$true] %s285_s15 }
  0x19   :  { %v160_v46 = vadd.f32 %v159_v43, %v158_v41  ;;  %v153_v47 = vadd.f32 %v152_v45, %v151_v44  ;;  %14 = vst.msk [vmem:[#allocation2] sm:$0xff] %vm13_vm3, %v317_v48  ;;  %vm190_vm4 = vcmask 130112   ;;  %vm255_vm5 = vcmask 1041409   ;;  %s295_s16 = scalar_lea.vmem %s286_s15, 128  ;;  %p300_p1 = scmp.lt.s32.totalorder %s286_s15, %s286_s15 }
  0x1a   :  { %137 = vadd.xlane.f32.xlu1 %v136_v28  ;;  %v185_v57 = vadd.s32 4294967288, %v180_v56  ;;  %v183_v0 = vsub.s32 %v180_v56, %v182_v60  ;;  %vm257_vm6 = vcmask 1042434   ;;  %vm259_vm7 = vcmask 1043459   ;;  %p296_p0 = scmp.ne.s32.totalorder %s286_s15, %s295_s16  ;;  %p301_p2 = scmp.lt.s32.totalorder %s295_s16, %s295_s16 }
  0x1b   :  { %130 = vadd.xlane.f32.xlu0 %v129_v29  ;;  %vm261_vm8 = vcmask 1044484   ;;  %vm263_vm9 = vcmask 1045509   ;;  %vm265_vm10 = vcmask 1046534   ;;  %vm267_vm11 = vcmask 1047559  }
  0x1c   :  { %v188_v61 = vsub.s32 %v185_v57, %v182_v60  ;;  %p302_p3 = por %p301_p2, %p300_p1 }
  0x1e   :  { %149 = vadd.xlane.f32.xlu1 %v148_v40  ;;  %p303_p4 = pnand %p302_p3, %p296_p0 }
  0x1f   :  { %142 = vadd.xlane.f32.xlu0 %v141_v42 }
  0x20   :  { %v63_v35 = vld [vmem:[#allocation2] sm:$0xff] }
  0x22   :  { %161 = vadd.xlane.f32.xlu1 %v160_v46 }
  0x23   :  { %154 = vadd.xlane.f32.xlu0 %v153_v47 }
  0x8f   :  { %v83_v49 = vpop.xlane.xlu1 %82 }
  0x90   :  { %v69_v50 = vpop.xlane.xlu0 %68  ;;  %v195_v7 = vrot.slane %v83_v49, %v183_v0 }
  0x91   :  { %v184_v8 = vrot.slane %v69_v50, %v183_v0 }
  0x93   :  { %v90_v51 = vpop.xlane.xlu1 %89 }
  0x94   :  { %v78_v52 = vpop.xlane.xlu0 %77  ;;  %v199_v1 = vrot.slane %v90_v51, %v188_v61 }
  0x95   :  { %v189_v2 = vrot.slane %v78_v52, %v188_v61 }
  0x96   :  { %v200_v13 = vsel %vm190_vm4, %v199_v1, %v195_v7 }
  0x97   :  { %v102_v54 = vpop.xlane.xlu1 %101  ;;  %v191_v14 = vsel %vm190_vm4, %v189_v2, %v184_v8 }
  0x98   :  { %v95_v55 = vpop.xlane.xlu0 %94  ;;  %v208_v4 = vrot.slane %v102_v54, %v188_v61  ;;  %v256_v23 = vsel %vm255_vm5, %v200_v13, %v191_v14 }
  0x99   :  { %v204_v5 = vrot.slane %v95_v55, %v183_v0 }
  0x9b   :  { %v114_v58 = vpop.xlane.xlu1 %113  ;;  %v209_v18 = vsel %vm190_vm4, %v208_v4, %v204_v5 }
  0x9c   :  { %v107_v59 = vpop.xlane.xlu0 %106  ;;  %v217_v9 = vrot.slane %v114_v58, %v188_v61  ;;  %v258_v25 = vsel %vm257_vm6, %v209_v18, %v256_v23 }
  0x9d   :  { %v213_v10 = vrot.slane %v107_v59, %v183_v0 }
  0x9f   :  { %v126_v62 = vpop.xlane.xlu1 %125  ;;  %v218_v21 = vsel %vm190_vm4, %v217_v9, %v213_v10 }
  0xa0   :  { %v119_v63 = vpop.xlane.xlu0 %118  ;;  %v226_v11 = vrot.slane %v126_v62, %v188_v61  ;;  %v260_v28 = vsel %vm259_vm7, %v218_v21, %v258_v25 }
  0xa1   :  { %v222_v12 = vrot.slane %v119_v63, %v183_v0 }
  0xa3   :  { %v138_v3 = vpop.xlane.xlu1 %137  ;;  %v227_v24 = vsel %vm190_vm4, %v226_v11, %v222_v12 }
  0xa4   :  { %v131_v6 = vpop.xlane.xlu0 %130  ;;  %v235_v15 = vrot.slane %v138_v3, %v188_v61  ;;  %v262_v32 = vsel %vm261_vm8, %v227_v24, %v260_v28 }
  0xa5   :  { %v231_v16 = vrot.slane %v131_v6, %v183_v0 }
  0xa7   :  { %v150_v17 = vpop.xlane.xlu1 %149  ;;  %v236_v26 = vsel %vm190_vm4, %v235_v15, %v231_v16 }
  0xa8   :  { %v244_v19 = vrot.slane %v150_v17, %v188_v61  ;;  %v143_v20 = vpop.xlane.xlu0 %142  ;;  %v264_v34 = vsel %vm263_vm9, %v236_v26, %v262_v32 }
  0xa9   :  { %v240_v22 = vrot.slane %v143_v20, %v183_v0 }
  0xab   :  { %v162_v27 = vpop.xlane.xlu1 %161  ;;  %v245_v29 = vsel %vm190_vm4, %v244_v19, %v240_v22 }
  0xac   :  { %v253_v30 = vrot.slane %v162_v27, %v188_v61  ;;  %v155_v31 = vpop.xlane.xlu0 %154  ;;  %v266_v36 = vsel %vm265_vm10, %v245_v29, %v264_v34 }
  0xad   :  { %v249_v33 = vrot.slane %v155_v31, %v183_v0 }
  0xaf   :  { %v254_v37 = vsel %vm190_vm4, %v253_v30, %v249_v33 }
  0xb0   :  { %v268_v38 = vsel %vm267_vm11, %v254_v37, %v266_v36 }
  0xb1   :  { %v270_v39 = vadd.f32 %v268_v38, %v63_v35 }
  0xb3   :  { %272 = vst.msk [vmem:[#allocation2] sm:$0xff] %vm13_vm3, %v270_v39 }
  0xba   :  { %v276_v40 = vld [vmem:[#allocation2] sm:$0xff] }
  0xbb   :  { %v277_v41 = vmul.f32 0.0034129692, %v276_v40 }
  0xbd   :  { %278 = vst.msk [vmem:[#allocation3] sm:$0xff] %vm13_vm3, %v277_v41 }
  0xbe   :  { %306 = shalt.err (!%p303_p4)
}
  0xbf   :  { %288 = dma.vmem_to_hbm [thread:$0]  %s286_s15, 128, %s520_s1, [#allocation4]  }
  0xc0   :  { %315 = dma.done.wait [#allocation4], 128  }
  0xc1   :  { %316 = vsyncadd [#allocation4], 4294967168 }
  0xc2   :  { %292 = vsyncpa [#allocation4], 1 }

</bundles_post_ra>
